<compile_context>
chip_gen: v7x
topology: tpu7x:2x2x1
jax: 0.10.0
libtpu: 0.0.40
codegen_flags: <defaults>
</compile_context>

<pallas_src>
import functools

import jax
import jax.numpy as jnp
from jax import lax
from jax.experimental import pallas as pl
from jax.experimental.pallas import tpu as pltpu

IGNORE_INDEX = -100
LANE = 128          # lane width — pad num_labels up to this
TILE_N_MAX = 512    # multiple of 256 (v6e/v7x MXU), sized well inside v7x VMEM


def _round_up(x, m):
    return ((x + m - 1) // m) * m


def _token_cls_decoder_kernel(num_labels, x_ref, w_ref, b_ref, labels_ref,
                              logits_ref, loss_ref, count_ref):
    # x: [T, H] bf16, w: [H, Lp] bf16, b: [1, Lp] f32, labels: [T, 1] int32
    x = x_ref[...]
    w = w_ref[...]
    b = b_ref[...]

    # Linear: logits = x @ W + b  (weight pre-transposed/padded to [H, Lp])
    logits = jnp.dot(x, w, preferred_element_type=jnp.float32) + b   # [T, Lp] f32
    logits_ref[...] = logits                                          # lane-dense store

    labels = labels_ref[...]                                          # [T, 1] int32
    t, l_pad = logits.shape

    col = lax.broadcasted_iota(jnp.int32, (t, l_pad), 1)
    # Exclude zero-padded label columns from max / log-sum-exp.
    masked_logits = jnp.where(col >= num_labels, jnp.float32(-1e30), logits)

    m = jnp.max(masked_logits, axis=-1, keepdims=True)                # [T, 1]
    lse = m + jnp.log(jnp.sum(jnp.exp(masked_logits - m), axis=-1, keepdims=True))

    # Gather the target logit via a one-hot built from the iota (no dynamic gather).
    onehot = (col == labels).astype(jnp.float32)                      # [T, Lp]
    target_logit = jnp.sum(logits * onehot, axis=-1, keepdims=True)   # [T, 1]

    valid = (labels != IGNORE_INDEX).astype(jnp.float32)              # [T, 1]
    nll = (lse - target_logit) * valid                                # [T, 1]

    # Per-tile partials, broadcast across a full lane so the store is unmasked.
    loss_ref[...] = jnp.broadcast_to(jnp.sum(nll), (1, 1, LANE))
    count_ref[...] = jnp.broadcast_to(jnp.sum(valid), (1, 1, LANE))


def token_classification_decoder(sequence_output, attention_mask, labels, weight, bias):
    """sequence_output: [B, S, H], attention_mask: [B, S] int, labels: [B, S] int.
    weight: [H, L] (pre-transposed vs. nn.Linear's [L, H]), bias: [L].
    Returns (logits [B, S, L] f32, loss scalar f32)."""
    B, S, H = sequence_output.shape
    L = weight.shape[1]
    N = B * S

    # --- wrapper-side prep (fuses into the surrounding XLA graph) -----------
    # active_labels = where(attention_mask == 1, labels, ignore_index)
    active_labels = jnp.where(attention_mask.reshape(-1) == 1,
                              labels.reshape(-1).astype(jnp.int32),
                              jnp.int32(IGNORE_INDEX))

    # Row-tiling: bf16 sublane granularity is 16; tile multiple of 256 when big.
    tile_n = min(TILE_N_MAX, _round_up(N, 16))
    n_pad = _round_up(N, tile_n)
    num_tiles = n_pad // tile_n

    # Lane-dense label dimension.
    l_pad = _round_up(L, LANE)

    # Pad rows (labels -> ignore so they never contribute to the loss).
    x = sequence_output.reshape(N, H).astype(jnp.bfloat16)
    x = jnp.pad(x, ((0, n_pad - N), (0, 0)))
    lab2 = jnp.pad(active_labels, (0, n_pad - N),
                   constant_values=IGNORE_INDEX).reshape(n_pad, 1)

    w_pad = jnp.pad(weight.astype(jnp.bfloat16), ((0, 0), (0, l_pad - L)))
    b_pad = jnp.pad(bias.astype(jnp.float32), (0, l_pad - L)).reshape(1, l_pad)

    out_shape = (
        jax.ShapeDtypeStruct((n_pad, l_pad), jnp.float32),        # logits (padded)
        jax.ShapeDtypeStruct((num_tiles, 1, LANE), jnp.float32),  # per-tile nll sums
        jax.ShapeDtypeStruct((num_tiles, 1, LANE), jnp.float32),  # per-tile counts
    )

    logits_pad, part_loss, part_count = pl.pallas_call(
        functools.partial(_token_cls_decoder_kernel, L),
        grid=(num_tiles,),
        in_specs=[
            pl.BlockSpec((tile_n, H), lambda i: (i, 0)),     # x tile (pipelined)
            pl.BlockSpec((H, l_pad), lambda i: (0, 0)),      # weight (resident)
            pl.BlockSpec((1, l_pad), lambda i: (0, 0)),      # bias (resident)
            pl.BlockSpec((tile_n, 1), lambda i: (i, 0)),     # active labels tile
        ],
        out_specs=(
            pl.BlockSpec((tile_n, l_pad), lambda i: (i, 0)),
            pl.BlockSpec((1, 1, LANE), lambda i: (i, 0, 0)),
            pl.BlockSpec((1, 1, LANE), lambda i: (i, 0, 0)),
        ),
        out_shape=out_shape,
        compiler_params=pltpu.CompilerParams(
            dimension_semantics=("parallel",),       # independent tiles -> megacore
            vmem_limit_bytes=48 * 1024 * 1024,       # inside v7x's 64 MiB physical
        ),
    )(x, w_pad, b_pad, lab2)

    # Final reduction + mean (nn.CrossEntropyLoss reduction='mean' over active
    # tokens). If count == 0 this is 0/0 = NaN, matching PyTorch.
    loss_sum = jnp.sum(part_loss[:, 0, 0])
    count = jnp.sum(part_count[:, 0, 0])
    loss = loss_sum / count

    logits = logits_pad[:N, :L].reshape(B, S, L)
    return logits, loss


def _reference(sequence_output, attention_mask, labels, weight, bias):
    """Pure-JAX f32 reference of the PyTorch forward (eval mode)."""
    B, S, H = sequence_output.shape
    L = weight.shape[1]
    logits = sequence_output.astype(jnp.float32) @ weight.astype(jnp.float32) + bias
    flat = logits.reshape(-1, L)
    active = jnp.where(attention_mask.reshape(-1) == 1,
                       labels.reshape(-1).astype(jnp.int32),
                       jnp.int32(IGNORE_INDEX))
    valid = (active != IGNORE_INDEX).astype(jnp.float32)
    lse = jax.nn.logsumexp(flat, axis=-1)
    tgt = jnp.take_along_axis(flat, jnp.clip(active, 0, L - 1)[:, None], axis=-1)[:, 0]
    loss = jnp.sum((lse - tgt) * valid) / jnp.sum(valid)
    return logits, loss


if __name__ == "__main__":
    # Module config: hidden_size=32, task_label_map[task_name]=8 labels
    B, S, H, L = 2, 8, 32, 8

    key = jax.random.PRNGKey(0)
    k_x, k_w, k_b, k_lab, k_mask = jax.random.split(key, 5)

    # Deterministic synthetic parameters (nn.Linear(hidden_size, num_labels)),
    # weight stored pre-transposed as [H, L].
    weight = jax.random.normal(k_w, (H, L), dtype=jnp.float32) * 0.02
    bias = jax.random.normal(k_b, (L,), dtype=jnp.float32) * 0.01

    # Inputs
    sequence_output = jax.random.normal(k_x, (B, S, H), dtype=jnp.float32)
    labels = jax.random.randint(k_lab, (B, S), 0, L, dtype=jnp.int32)
    attention_mask = (jax.random.uniform(k_mask, (B, S)) > 0.25).astype(jnp.int32)
    attention_mask = attention_mask.at[:, 0].set(1)  # at least one active token

    logits, loss = token_classification_decoder(
        sequence_output, attention_mask, labels, weight, bias)
    jax.block_until_ready((logits, loss))

    assert logits.shape == (B, S, L)
    assert loss.shape == ()
    assert bool(jnp.isfinite(loss))

    # Loose correctness check vs f32 reference (kernel uses bf16 activations).
    ref_logits, ref_loss = _reference(sequence_output, attention_mask, labels,
                                      weight, bias)
    assert jnp.allclose(logits, ref_logits, atol=5e-2, rtol=5e-2)
    assert jnp.allclose(loss, ref_loss, atol=5e-2, rtol=5e-2)

    print("KERNEL_OK")
</pallas_src>

<mosaic_0001>
module attributes {stable_mosaic.version = 11 : i64} {
  func.func @_token_cls_decoder_kernel(%arg0: i32, %arg1: memref<16x32xbf16, #tpu.memory_space<vmem>>, %arg2: memref<32x128xbf16, #tpu.memory_space<vmem>>, %arg3: memref<1x128xf32, #tpu.memory_space<vmem>>, %arg4: memref<16x1xi32, #tpu.memory_space<vmem>>, %arg5: memref<16x128xf32, #tpu.memory_space<vmem>>, %arg6: memref<1x1x128xf32, #tpu.memory_space<vmem>>, %arg7: memref<1x1x128xf32, #tpu.memory_space<vmem>>) attributes {dimension_semantics = [#tpu.dimension_semantics<parallel>], iteration_bounds = array<i64: 1>, scalar_prefetch = 0 : i64, scratch_operands = 0 : i64, tpu.core_type = #tpu.core_type<tc>, window_params = [{transform_indices = @transform_0, window_bounds = array<i64: 16, 32>}, {pipeline_mode = #tpu.pipeline_mode<synchronous>, transform_indices = @transform_1, window_bounds = array<i64: 32, 128>}, {pipeline_mode = #tpu.pipeline_mode<synchronous>, transform_indices = @transform_2, window_bounds = array<i64: 1, 128>}, {transform_indices = @transform_3, window_bounds = array<i64: 16, 1>}, {transform_indices = @transform_4, window_bounds = array<i64: 16, 128>}, {transform_indices = @transform_5, window_bounds = array<i64: 1, 1, 128>}, {transform_indices = @transform_6, window_bounds = array<i64: 1, 1, 128>}]} {
    %c0 = arith.constant 0 : index
    %c0_0 = arith.constant 0 : index
    %0 = vector.load %arg1[%c0, %c0_0] : memref<16x32xbf16, #tpu.memory_space<vmem>>, vector<16x32xbf16>
    %c0_1 = arith.constant 0 : index
    %c0_2 = arith.constant 0 : index
    %1 = vector.load %arg2[%c0_1, %c0_2] : memref<32x128xbf16, #tpu.memory_space<vmem>>, vector<32x128xbf16>
    %c0_3 = arith.constant 0 : index
    %c0_4 = arith.constant 0 : index
    %2 = vector.load %arg3[%c0_3, %c0_4] : memref<1x128xf32, #tpu.memory_space<vmem>>, vector<1x128xf32>
    %cst = arith.constant dense<0.000000e+00> : vector<16x128xf32>
    %3 = tpu.matmul %0, %1, %cst {dimension_numbers = #tpu.dot_dimension_numbers<[1], [0], [0], [1], [0, 0, 1, 1], [], []>} : vector<16x32xbf16>, vector<32x128xbf16>, vector<16x128xf32> -> vector<16x128xf32>
    %4 = vector.broadcast %2 : vector<1x128xf32> to vector<16x128xf32>
    %5 = arith.addf %3, %4 : vector<16x128xf32>
    %c0_5 = arith.constant 0 : index
    %c0_6 = arith.constant 0 : index
    %6 = vector.load %arg5[%c0_5, %c0_6] : memref<16x128xf32, #tpu.memory_space<vmem>>, vector<16x128xf32>
    tpu.vector_store %arg5[%c0_5, %c0_6], %5 {strides = array<i32>} : memref<16x128xf32, #tpu.memory_space<vmem>>, vector<16x128xf32>,
    %c0_7 = arith.constant 0 : index
    %c0_8 = arith.constant 0 : index
    %7 = vector.load %arg4[%c0_7, %c0_8] : memref<16x1xi32, #tpu.memory_space<vmem>>, vector<16x1xi32>
    %8 = tpu.iota {dimensions = array<i32: 1>} : vector<16x128xi32>
    %c8_i32 = arith.constant 8 : i32
    %9 = vector.broadcast %c8_i32 : i32 to vector<16x128xi32>
    %10 = arith.cmpi sge, %8, %9 : vector<16x128xi32>
    %cst_9 = arith.constant -1.000000e+30 : f32
    %11 = vector.broadcast %cst_9 : f32 to vector<16x128xf32>
    %12 = arith.select %10, %11, %5 : vector<16x128xi1>, vector<16x128xf32>
    %cst_10 = arith.constant dense<0xFF800000> : vector<16xf32>
    %13 = vector.multi_reduction <maximumf>, %12, %cst_10 [1] : vector<16x128xf32> to vector<16xf32>
    %14 = vector.shape_cast %13 : vector<16xf32> to vector<16x1xf32>
    %15 = vector.broadcast %14 : vector<16x1xf32> to vector<16x128xf32>
    %16 = arith.subf %12, %15 : vector<16x128xf32>
    %17 = math.exp %16 : vector<16x128xf32>
    %cst_11 = arith.constant dense<0.000000e+00> : vector<16xf32>
    %18 = vector.multi_reduction <add>, %17, %cst_11 [1] : vector<16x128xf32> to vector<16xf32>
    %19 = vector.shape_cast %18 : vector<16xf32> to vector<16x1xf32>
    %20 = math.log %19 : vector<16x1xf32>
    %21 = arith.addf %14, %20 : vector<16x1xf32>
    %22 = vector.broadcast %7 : vector<16x1xi32> to vector<16x128xi32>
    %23 = arith.cmpi eq, %8, %22 : vector<16x128xi32>
    %24 = arith.extui %23 : vector<16x128xi1> to vector<16x128xi32>
    %25 = arith.sitofp %24 : vector<16x128xi32> to vector<16x128xf32>
    %26 = arith.mulf %5, %25 : vector<16x128xf32>
    %cst_12 = arith.constant dense<0.000000e+00> : vector<16xf32>
    %27 = vector.multi_reduction <add>, %26, %cst_12 [1] : vector<16x128xf32> to vector<16xf32>
    %28 = vector.shape_cast %27 : vector<16xf32> to vector<16x1xf32>
    %c-100_i32 = arith.constant -100 : i32
    %29 = vector.broadcast %c-100_i32 : i32 to vector<16x1xi32>
    %30 = arith.cmpi ne, %7, %29 : vector<16x1xi32>
    %31 = arith.extui %30 : vector<16x1xi1> to vector<16x1xi32>
    %32 = arith.sitofp %31 : vector<16x1xi32> to vector<16x1xf32>
    %33 = arith.subf %21, %28 : vector<16x1xf32>
    %34 = arith.mulf %33, %32 : vector<16x1xf32>
    %35 = vector.shape_cast %34 : vector<16x1xf32> to vector<1x16x1xf32>
    %cst_13 = arith.constant dense<0.000000e+00> : vector<1xf32>
    %36 = vector.multi_reduction <add>, %35, %cst_13 [1, 2] : vector<1x16x1xf32> to vector<1xf32>
    %37 = vector.shape_cast %36 : vector<1xf32> to vector<1x1x1xf32>
    %38 = vector.extract %37[0, 0, 0] : f32 from vector<1x1x1xf32>
    %39 = vector.broadcast %38 : f32 to vector<1x1x128xf32>
    %c0_14 = arith.constant 0 : index
    %c0_15 = arith.constant 0 : index
    %c0_16 = arith.constant 0 : index
    %40 = vector.load %arg6[%c0_14, %c0_15, %c0_16] : memref<1x1x128xf32, #tpu.memory_space<vmem>>, vector<1x1x128xf32>
    tpu.vector_store %arg6[%c0_14, %c0_15, %c0_16], %39 {strides = array<i32>} : memref<1x1x128xf32, #tpu.memory_space<vmem>>, vector<1x1x128xf32>,
    %41 = vector.shape_cast %32 : vector<16x1xf32> to vector<1x16x1xf32>
    %cst_17 = arith.constant dense<0.000000e+00> : vector<1xf32>
    %42 = vector.multi_reduction <add>, %41, %cst_17 [1, 2] : vector<1x16x1xf32> to vector<1xf32>
    %43 = vector.shape_cast %42 : vector<1xf32> to vector<1x1x1xf32>
    %44 = vector.extract %43[0, 0, 0] : f32 from vector<1x1x1xf32>
    %45 = vector.broadcast %44 : f32 to vector<1x1x128xf32>
    %c0_18 = arith.constant 0 : index
    %c0_19 = arith.constant 0 : index
    %c0_20 = arith.constant 0 : index
    %46 = vector.load %arg7[%c0_18, %c0_19, %c0_20] : memref<1x1x128xf32, #tpu.memory_space<vmem>>, vector<1x1x128xf32>
    tpu.vector_store %arg7[%c0_18, %c0_19, %c0_20], %45 {strides = array<i32>} : memref<1x1x128xf32, #tpu.memory_space<vmem>>, vector<1x1x128xf32>,
    return
  }
  func.func @transform_0(%arg0: i32) -> (i32, i32) {
    %c0_i32 = arith.constant 0 : i32
    %c0_i32_0 = arith.constant 0 : i32
    return %arg0, %c0_i32 : i32, i32
  }
  func.func @transform_1(%arg0: i32) -> (i32, i32) {
    %c0_i32 = arith.constant 0 : i32
    %c0_i32_0 = arith.constant 0 : i32
    %c0_i32_1 = arith.constant 0 : i32
    return %c0_i32, %c0_i32_0 : i32, i32
  }
  func.func @transform_2(%arg0: i32) -> (i32, i32) {
    %c0_i32 = arith.constant 0 : i32
    %c0_i32_0 = arith.constant 0 : i32
    %c0_i32_1 = arith.constant 0 : i32
    return %c0_i32, %c0_i32_0 : i32, i32
  }
  func.func @transform_3(%arg0: i32) -> (i32, i32) {
    %c0_i32 = arith.constant 0 : i32
    %c0_i32_0 = arith.constant 0 : i32
    return %arg0, %c0_i32 : i32, i32
  }
  func.func @transform_4(%arg0: i32) -> (i32, i32) {
    %c0_i32 = arith.constant 0 : i32
    %c0_i32_0 = arith.constant 0 : i32
    return %arg0, %c0_i32 : i32, i32
  }
  func.func @transform_5(%arg0: i32) -> (i32, i32, i32) {
    %c0_i32 = arith.constant 0 : i32
    %c0_i32_0 = arith.constant 0 : i32
    %c0_i32_1 = arith.constant 0 : i32
    return %arg0, %c0_i32, %c0_i32_0 : i32, i32, i32
  }
  func.func @transform_6(%arg0: i32) -> (i32, i32, i32) {
    %c0_i32 = arith.constant 0 : i32
    %c0_i32_0 = arith.constant 0 : i32
    %c0_i32_1 = arith.constant 0 : i32
    return %arg0, %c0_i32, %c0_i32_0 : i32, i32, i32
  }
}

</mosaic_0001>

<bundles_post_ra>
// kernel: tpu_custom_call.1
= control target key start
LH: loop header
LB: loop body
LE: loop exit
PB: predicated region body
PF: predicated region fallthrough
CT: control target
= control target key end

     0   :  { %12 = vsyncpa [#allocation3], 0  ;;  %s497_s0 = inlined_call_operand.hbm [shape: bf16[16,32], index: 0, kind: input, shape index: {}]   ;;  %s498_s1 = inlined_call_operand.vmem [shape: bf16[32,128], index: 1, kind: input, shape index: {}]   ;;  %s499_s2 = inlined_call_operand.vmem [shape: f32[1,128], index: 2, kind: input, shape index: {}]   ;;  %s500_s3 = inlined_call_operand.vmem [shape: s32[16,1], index: 3, kind: input, shape index: {}]   ;;  %s501_s4 = inlined_call_operand.hbm [shape: f32[16,128], index: 4, kind: output, shape index: {0}]   ;;  %s502_s5 = inlined_call_operand.hbm [shape: f32[1,1,128], index: 5, kind: output, shape index: {1}]   ;;  %s503_s6 = inlined_call_operand.hbm [shape: f32[1,1,128], index: 6, kind: output, shape index: {2}]  }
   0x1   :  { %13 = vsyncpa [#allocation4], 0 }
   0x2   :  { %14 = vsyncpa [#allocation7], 0  ;;  %s384_s21 = smov [#allocation2]   ;;  %s290_s25 = scalar_lea.hbm %s497_s0, 128 }
   0x3   :  { %s20_s22 = sshll.u32 %s384_s21, 4  ;;  %p291_p0 = scmp.ne.s32.totalorder %s497_s0, %s290_s25  ;;  %s21_s22 = int_to_ptr.vmem [resolvable:$true] %s20_s22 }
   0x4   :  { %p294_p1 = scmp.lt.u32.totalorder %s290_s25, %s497_s0 }
   0x6   :  { %p296_p2 = pnand %p294_p1, %p291_p0 }
   0x8   :  { %299 = shalt.err (!%p296_p2)
}
   0x9   :  { %s300_s30 = scalar_lea.vmem %s21_s22, 128  ;;  %p305_p4 = scmp.lt.s32.totalorder %s21_s22, %s21_s22 }
   0xa   :  { %p301_p3 = scmp.ne.s32.totalorder %s21_s22, %s300_s30  ;;  %p306_p5 = scmp.lt.s32.totalorder %s300_s30, %s300_s30 }
   0xc   :  { %p307_p6 = por %p306_p5, %p305_p4 }
   0xe   :  { %p308_p7 = pnand %p307_p6, %p301_p3 }
  0x10   :  { %311 = shalt.err (!%p308_p7)
}
  0x11   :  { %s385_s7 = smov 64   ;;  %s386_s8 = smov 4  }
  0x12   :  { %26 = dma.hbm_to_vmem [thread:$0]  %s497_s0, 128, %s21_s22, [#allocation3], %s385_s7, %s385_s7, %s386_s8  }
  0x13   :  { %378 = dma.done.wait [#allocation3], 128  }
  0x14   :  { %379 = vsyncadd [#allocation3], 4294967168  ;;  %v387_v0 = vmov 0.0   ;;  %vm388_vm0 = vmmov 0   ;;  %v389_v1 = vmov 0   ;;  %v279_v2 = vld [vmem:[%s498_s1] sm:$0xff]   ;;  %v116_v7 = vlaneseq }
  0x15   :  { %254 = vmatprep.subr.bf16.mxu0 %v387_v0  ;;  %258 = vmatprep.mubr.msk.bf16.mxu0 %vm388_vm0, %v387_v0  ;;  %v280_v3 = vld [vmem:[%s498_s1 + $0x8] sm:$0xff]   ;;  %v114_v4 = vld [vmem:[%s500_s3] sm:$0xff]  ;;  %vm67_vm1 = vcmask 261120   ;;  %vm169_vm7 = vcmask 7168  }
  0x16   :  { %277 = vset.pattern.permute.xlu1 %v389_v1  ;;  %278 = vset.pattern.permute.xlu0 %v389_v1  ;;  %v281_v5 = vld [vmem:[#allocation2] sm:$0xff]   ;;  %v115_v6 = vld [vmem:[%s500_s3 + $0x8] sm:$0xff]  ;;  %v117_v9 = vand.u32 127, %v116_v7  ;;  %vm159_vm5 = vcmp.ne.s32.totalorder %v114_v4, 4294967196 }
  0x17   :  { %255 = vmatpush3.bf16.msra.mxu0 %v279_v2  ;;  %142 = vperm.xlu1 %277, %v114_v4   ;;  %v242_v11 = vld [vmem:[%s499_s2] ss:$0 sm:$0xff]  ;;  %vm160_vm6 = vcmp.ne.s32.totalorder %v115_v6, 4294967196  ;;  %v249_v32 = vsel %vm159_vm5, 1.0, %v387_v0  ;;  %s390_s2 = smov [#allocation5]  }
  0x18   :  { %256 = vmatprep.subr.bf16.mxu0 %v387_v0  ;;  %vm118_vm4 = vcmp.ge.s32.totalorder %v117_v9, 8  ;;  %v250_v33 = vsel %vm160_vm6, 1.0, %v387_v0  ;;  %v184_v34 = vsel %vm169_vm7, %v249_v32, 0.0  ;;  %s203_s3 = sshll.u32 %s390_s2, 4  ;;  %s204_s3 = int_to_ptr.vmem [resolvable:$true] %s203_s3 }
  0x19   :  { %v185_v35 = vsel %vm169_vm7, %v250_v33, 0.0  ;;  %s312_s19 = scalar_lea.vmem %s204_s3, 256  ;;  %p317_p9 = scmp.lt.s32.totalorder %s204_s3, %s204_s3 }
  0x1a   :  { %v186_v36 = vadd.f32 %v185_v35, %v184_v34  ;;  %p313_p8 = scmp.ne.s32.totalorder %s204_s3, %s312_s19  ;;  %p318_p10 = scmp.lt.s32.totalorder %s312_s19, %s312_s19 }
  0x1b   :  { %257 = vmatpush3.bf16.msra.mxu0 %v280_v3  ;;  %145 = vperm.xlu1 %277, %v115_v6  }
  0x1c   :  { %p319_p11 = por %p318_p10, %p317_p9 }
  0x1e   :  { %259 = vmatmul.mubr.msk.bf16.vlgmr.msra.gmra.mrb[0].mxu0 %vm67_vm1, %v281_v5  ;;  %p320_p12 = pnand %p319_p11, %p313_p8 }
  0x96   :  { %v143_v8 = vpop.permute.xlu1 %142 }
  0x97   :  { %vm147_vm2 = vcmp.eq.s32.totalorder %v117_v9, %v143_v8 }
  0x98   :  { %v247_v12 = vsel %vm147_vm2, 1.0, %v387_v0 }
  0x9a   :  { %v146_v10 = vpop.permute.xlu1 %145 }
  0x9b   :  { %vm148_vm3 = vcmp.eq.s32.totalorder %v117_v9, %v146_v10 }
  0x9c   :  { %v248_v16 = vsel %vm148_vm3, 1.0, %v387_v0 }
  0xf1   :  { %v105_v13 = vpop.f32.mrb[0].mxu0 }
  0xf2   :  { %v106_v14 = vadd.f32 %v242_v11, %v105_v13  ;;  %v260_v15 = vpop.f32.mrb[1].mxu0 }
  0xf3   :  { %v108_v17 = vpop.f32.mrb[2].mxu0 }
  0xf4   :  { %112 = vst [vmem:[#allocation5] sm:$0xff] %v106_v14  ;;  %v109_v18 = vadd.f32 %v242_v11, %v108_v17  ;;  %v261_v19 = vpop.f32.mrb[3].mxu0  ;;  %v119_v20 = vsel %vm118_vm4, -1e+30, %v106_v14  ;;  %v153_v21 = vmul.f32 %v247_v12, %v106_v14 }
  0xf5   :  { %121 = vmax.xlane.f32.xlu0 %v119_v20 }
  0xf6   :  { %113 = vst [vmem:[#allocation5 + $0x8] sm:$0xff] %v109_v18  ;;  %v154_v22 = vmul.f32 %v248_v16, %v109_v18  ;;  %v120_v23 = vsel %vm118_vm4, -1e+30, %v109_v18 }
  0xf9   :  { %123 = vmax.xlane.f32.xlu0 %v120_v23 }
 0x182   :  { %v122_v24 = vpop.xlane.xlu0 %121 }
 0x183   :  { %v125_v25 = vsub.f32 %v119_v20, %v122_v24 }
 0x185   :  { %v127_v26 = vmul.f32 1.442695, %v125_v25 }
 0x186   :  { %v124_v27 = vpop.xlane.xlu0 %123 }
 0x187   :  { %282 = vpow2.f32 %v127_v26  ;;  %v126_v28 = vsub.f32 %v120_v23, %v124_v27 }
 0x189   :  { %v129_v29 = vmul.f32 1.442695, %v126_v28 }
 0x18b   :  { %284 = vpow2.f32 %v129_v29 }
 0x191   :  { %v283_v30 = vpop.eup %282 }
 0x192   :  { %131 = vadd.xlane.f32.xlu0 %v283_v30 }
 0x195   :  { %v285_v31 = vpop.eup %284 }
 0x196   :  { %155 = vadd.xlane.f32.xlu0 %v153_v21  ;;  %133 = vadd.xlane.f32.xlu1 %v285_v31 }
 0x19a   :  { %157 = vadd.xlane.f32.xlu0 %v154_v22 }
 0x21f   :  { %v132_v37 = vpop.xlane.xlu0 %131 }
 0x220   :  { %286 = vlog2.f32 %v132_v37 }
 0x223   :  { %v134_v38 = vpop.xlane.xlu1 %133  ;;  %v156_v41 = vpop.xlane.xlu0 %155 }
 0x224   :  { %288 = vlog2.f32 %v134_v38 }
 0x227   :  { %v158_v47 = vpop.xlane.xlu0 %157 }
 0x22a   :  { %v287_v39 = vpop.eup %286 }
 0x22b   :  { %v136_v40 = vmul.f32 0.6931472, %v287_v39 }
 0x22d   :  { %v139_v42 = vadd.f32 %v136_v40, %v122_v24 }
 0x22e   :  { %v289_v43 = vpop.eup %288 }
 0x22f   :  { %v138_v44 = vmul.f32 0.6931472, %v289_v43  ;;  %v165_v45 = vsub.f32 %v139_v42, %v156_v41 }
 0x231   :  { %v140_v46 = vadd.f32 %v138_v44, %v124_v27  ;;  %v167_v48 = vmul.f32 %v249_v32, %v165_v45 }
 0x233   :  { %v166_v49 = vsub.f32 %v140_v46, %v158_v47  ;;  %v170_v51 = vsel %vm169_vm7, %v167_v48, 0.0 }
 0x235   :  { %v168_v50 = vmul.f32 %v250_v33, %v166_v49 }
 0x237   :  { %v171_v52 = vsel %vm169_vm7, %v168_v50, 0.0 }
 0x238   :  { %v172_v53 = vadd.f32 %v171_v52, %v170_v51 }
 0x23a   :  { %173 = vadd.xlane.f32.xlu0 %v172_v53 }
 0x23e   :  { %187 = vadd.xlane.f32.xlu0 %v186_v36 }
 0x23f   :  { %323 = shalt.err (!%p320_p12)
}
 0x240   :  { %s324_s22 = scalar_lea.hbm %s501_s4, 256 }
 0x241   :  { %p325_p13 = scmp.ne.s32.totalorder %s501_s4, %s324_s22  ;;  %p328_p0 = scmp.lt.u32.totalorder %s324_s22, %s501_s4 }
 0x243   :  { %p330_p1 = pnand %p328_p0, %p325_p13 }
 0x245   :  { %333 = shalt.err (!%p330_p1)
}
 0x246   :  { %s391_s27 = smov 128   ;;  %s392_s28 = smov 8  }
 0x247   :  { %209 = dma.vmem_to_hbm [thread:$0]  %s204_s3, 256, %s501_s4, [#allocation4], %s391_s27, %s391_s27, %s392_s28  }
 0x248   :  { %s393_s7 = smov [#allocation6]   ;;  %s394_s4 = smov [#allocation8]  }
 0x249   :  { %s216_s8 = sshll.u32 %s393_s7, 4  ;;  %s226_s10 = sshll.u32 %s394_s4, 4  ;;  %s217_s8 = int_to_ptr.vmem [resolvable:$true] %s216_s8  ;;  %s227_s10 = int_to_ptr.vmem [resolvable:$true] %s226_s10 }
 0x24a   :  { %s334_s11 = scalar_lea.vmem %s217_s8, 16  ;;  %s338_s12 = scalar_lea.vmem %s217_s8, 32 }
 0x24b   :  { %p335_p2 = scmp.ne.s32.totalorder %s217_s8, %s334_s11  ;;  %p339_p3 = scmp.lt.s32.totalorder %s217_s8, %s217_s8 }
 0x24c   :  { %p340_p4 = scmp.lt.s32.totalorder %s338_s12, %s334_s11 }
 0x24e   :  { %p341_p5 = por %p340_p4, %p339_p3 }
 0x250   :  { %p342_p6 = pnand %p341_p5, %p335_p2 }
 0x2c7   :  { %v174_v54 = vpop.xlane.xlu0 %173 }
 0x2c8   :  { %v175_v55 = vrot.slane %v174_v54, 4 }
 0x2ca   :  { %v176_v56 = vadd.f32 %v175_v55, %v174_v54 }
 0x2cb   :  { %v188_v57 = vpop.xlane.xlu0 %187 }
 0x2cc   :  { %v177_v58 = vrot.slane %v176_v56, 2  ;;  %v189_v59 = vrot.slane %v188_v57, 4 }
 0x2ce   :  { %v190_v60 = vadd.f32 %v189_v59, %v188_v57  ;;  %v178_v61 = vadd.f32 %v177_v58, %v176_v56 }
 0x2d0   :  { %v191_v62 = vrot.slane %v190_v60, 2  ;;  %v179_v63 = vrot.slane %v178_v61, 1 }
 0x2d2   :  { %v192_v0 = vadd.f32 %v191_v62, %v190_v60  ;;  %v180_v1 = vadd.f32 %v179_v63, %v178_v61 }
 0x2d4   :  { %262 = vpush %v180_v1  ;;  %v193_v2 = vrot.slane %v192_v0, 1 }
 0x2d6   :  { %v194_v3 = vadd.f32 %v193_v2, %v192_v0 }
 0x2d8   :  { %264 = vpush %v194_v3 }
 0x305   :  { %s263_s9 = spop %262 }
 0x306   :  { %v182_v4 = vstv %s263_s9 }
 0x307   :  { %183 = vst [vmem:[#allocation6] sm:$0x1] %v182_v4 }
 0x308   :  { %345 = shalt.err (!%p342_p6)
}
 0x309   :  { %s346_s0 = scalar_lea.hbm %s502_s5, 16 }
 0x30a   :  { %p347_p7 = scmp.ne.s32.totalorder %s502_s5, %s346_s0  ;;  %p350_p8 = scmp.lt.u32.totalorder %s346_s0, %s502_s5 }
 0x30c   :  { %p352_p9 = pnand %p350_p8, %p347_p7 }
 0x30e   :  { %355 = shalt.err (!%p352_p9)
}
 0x30f   :  { %219 = dma.vmem_to_hbm [thread:$0]  %s217_s8, 16, %s502_s5, [#allocation7]  }
 0x310   :  { %s265_s3 = spop %264  ;;  %s356_s19 = scalar_lea.vmem %s227_s10, 16 }
 0x311   :  { %v196_v5 = vstv %s265_s3  ;;  %p357_p10 = scmp.ne.s32.totalorder %s227_s10, %s356_s19  ;;  %s360_s20 = scalar_lea.vmem %s227_s10, 32 }
 0x312   :  { %197 = vst [vmem:[#allocation8] sm:$0x1] %v196_v5  ;;  %p361_p11 = scmp.lt.s32.totalorder %s227_s10, %s227_s10  ;;  %p362_p12 = scmp.lt.s32.totalorder %s360_s20, %s356_s19 }
 0x314   :  { %p363_p13 = por %p362_p12, %p361_p11 }
 0x316   :  { %p364_p0 = pnand %p363_p13, %p357_p10 }
 0x318   :  { %367 = shalt.err (!%p364_p0)
}
 0x319   :  { %s368_s23 = scalar_lea.hbm %s503_s6, 16 }
 0x31a   :  { %p369_p1 = scmp.ne.s32.totalorder %s503_s6, %s368_s23  ;;  %p372_p2 = scmp.lt.u32.totalorder %s368_s23, %s503_s6 }
 0x31c   :  { %p374_p3 = pnand %p372_p2, %p369_p1 }
 0x31e   :  { %377 = shalt.err (!%p374_p3)
}
 0x31f   :  { %229 = dma.vmem_to_hbm [thread:$0]  %s227_s10, 16, %s503_s6, [#allocation7]  }
 0x320   :  { %380 = dma.done.wait [#allocation4], 256  }
 0x321   :  { %381 = vsyncadd [#allocation4], 4294967040 }
 0x322   :  { %382 = dma.done.wait [#allocation7], 32  }
 0x323   :  { %383 = vsyncadd [#allocation7], 4294967264 }
 0x324   :  { %239 = vsyncpa [#allocation3], 1 }
 0x325   :  { %240 = vsyncpa [#allocation4], 1 }
 0x326   :  { %241 = vsyncpa [#allocation7], 1 }

</bundles_post_ra>
